<compile_context>
chip_gen: v6e
topology: v6e:2x2x1
jax: 0.10.0
libtpu: 0.0.40
codegen_flags: <defaults>
</compile_context>

<pallas_src>
import jax
import jax.numpy as jnp
from jax.experimental import pallas as pl
from jax.experimental.pallas import tpu as pltpu


# ---------------- static gridworld-encoder geometry for obs_dim = (4,16,16) ----------------
_C_IN = 4              # input channels
_HW = 16               # input spatial size
_G = 8                 # spatial grid after space-to-depth(2): 8 x 8
_S2D = _C_IN * 4       # 16 channels after space-to-depth
_C1 = 8                # conv1 out channels
_C2 = 16               # conv2 out channels
_V1 = (_HW - 4) // 2 + 1   # 7: conv1 valid output grid
_V2 = _V1 - 3 + 1          # 5: conv2 valid output grid
_LANE = _G * _G        # 64 lanes per sample (flat 8x8 s2d grid)
_FPC = _V2 * _G        # 40 features kept per conv2 channel (y<5, x<8; x>=5 rows are zero)
_HID = 64              # GRIDWORLD_HIDDEN_SIZE
_ENC_OUT = _C2 * _V2 * _V2   # 400 = encoder_output_size

# Reach analysis for the "full-width" implicit-GEMM trick: the farthest lane
# (within a sample's 64-lane block) read on the path to any kept output.
# conv2 keeps (y<5, x<5); its taps reach conv1 lane 8*6+6 = 54; conv1's taps
# reach input lane 54 + 8+1 = 63.  Both < 64 => 64-lane sample blocks never
# contaminate each other and no zero padding is required.
_H1_REACH = _G * (_V2 - 1 + 2) + (_V2 - 1 + 2)     # 54
_X_REACH = _H1_REACH + _G + 1                      # 63
assert _H1_REACH < _LANE and _X_REACH < _LANE
assert _S2D == 16 and _FPC == 40 and 2 * _HID == 128


def _rot(v, off):
    """shifted[:, m] = v[:, (m + off) % width]  (bring later lanes to the front)."""
    if off == 0:
        return v
    return pltpu.roll(v, v.shape[-1] - off, axis=1)


# ----------------------------- fused Pallas kernel -----------------------------

def _dddqn_fused_kernel(x_ref, w1_ref, b1_ref, w2_ref, b2_ref,
                        wh1_ref, bh1_ref, wh2_ref, bh2_ref, q_ref):
    """Whole DDDQN forward for a small batch; everything stays in vregs/VMEM."""
    batch = q_ref.shape[0]
    mdt = w1_ref.dtype                      # MXU operand dtype (bf16 or f32)

    # conv1 (k=4, s=2) as ONE implicit GEMM over the whole batch.  The wrapper
    # space-to-depths the observation (factor 2), turning conv1 into a stride-1
    # k=2 conv whose taps are pure lane rotations of the flat 8x8 grid.
    x = x_ref[...]                                                   # (16, B*64) f32
    p1 = jnp.concatenate([_rot(x, ki * _G + kj)
                          for ki in range(2) for kj in range(2)], axis=0)
    h1 = jnp.maximum(
        jnp.dot(w1_ref[...], p1.astype(mdt),
                preferred_element_type=jnp.float32) + b1_ref[...], 0.0)   # (8, B*64)

    # conv2 (k=3, s=1) on the full-width conv1 rows, again one GEMM for all B.
    p2 = jnp.concatenate([_rot(h1, di * _G + dj)
                          for di in range(3) for dj in range(3)], axis=0)
    h2 = jnp.maximum(
        jnp.dot(w2_ref[...], p2.astype(mdt),
                preferred_element_type=jnp.float32) + b2_ref[...], 0.0)   # (16, B*64)
    h2 = h2.astype(mdt)

    # Fused dueling heads, layer 1 (value cols 0..63 || advantage cols 64..127).
    # The (channel, spatial) flatten is folded into a sum of per-channel
    # (B, 40) x (40, 128) dots: no scratch, no masked stores, no relayout.
    acc = jnp.zeros((batch, 2 * _HID), jnp.float32)
    for c in range(_C2):
        lhs = jnp.concatenate(
            [h2[c:c + 1, b * _LANE: b * _LANE + _FPC] for b in range(batch)],
            axis=0)                                                  # (B, 40)
        acc = acc + jnp.dot(lhs, wh1_ref[c], preferred_element_type=jnp.float32)
    h = jnp.maximum(acc + bh1_ref[...], 0.0)                         # (B, 128)

    # Layer 2 is block-diagonal: col 0 = value, cols 1.. = advantages, then the
    # dueling combine.  All element-wise math stays f32 (v5e-friendly).
    va = (jnp.dot(h.astype(mdt), wh2_ref[...],
                  preferred_element_type=jnp.float32) + bh2_ref[...])    # (B, 1+A)
    v = va[:, 0:1]
    a = va[:, 1:]
    q_ref[...] = v + (a - jnp.mean(a, axis=1, keepdims=True))


# --------------------------------- wrapper ---------------------------------

def dddqn_forward(packed, x):
    """Full DDDQNNetwork forward. x: (B, 4, 16, 16) NCHW float32 -> (B, n_acts)."""
    (w1p, b1, w2p, b2, wh1p, bh1p, wh2p, bh2p) = packed
    assert x.ndim == 4 and x.shape[1:] == (_C_IN, _HW, _HW), x.shape
    n_acts = wh2p.shape[1] - 1
    batch = x.shape[0]

    # Keep the lane extent a multiple of 128 (two 64-lane sample blocks per vreg).
    pad_b = (-batch) % 2
    if pad_b:
        x = jnp.pad(x, ((0, pad_b), (0, 0), (0, 0), (0, 0)))
    bp = batch + pad_b

    # Single cheap layout op on the observation (layout plumbing, not compute):
    # space-to-depth by 2, flatten the 8x8 grid, samples side by side on lanes.
    xs = (x.reshape(bp, _C_IN, _G, 2, _G, 2)
            .transpose(1, 3, 5, 0, 2, 4)              # (c, rp, cp, b, y, x)
            .reshape(_S2D, bp * _LANE))               # (16, B*64)

    vmem = pl.BlockSpec(memory_space=pltpu.MemorySpace.VMEM)
    # TODO(synk): for large batches, move the batch onto a leading "parallel" grid
    # axis (shards across the two TensorCores on v7x) with constant index_maps on
    # the weight BlockSpecs; at B=2 the no-grid fused call is strictly better.
    q = pl.pallas_call(
        _dddqn_fused_kernel,
        out_shape=jax.ShapeDtypeStruct((bp, n_acts), jnp.float32),
        in_specs=[vmem] * 9,
        out_specs=vmem,
        compiler_params=pltpu.CompilerParams(
            # Let XLA fuse the tiny space-to-depth producer into this call so the
            # latency-bound forward stays a single launch.
            allow_input_fusion=[True] + [False] * 8),
    )(xs, w1p, b1, w2p, b2, wh1p, bh1p, wh2p, bh2p)
    return q[:batch] if pad_b else q


# ------------------------ one-time parameter packing ------------------------

def pack_params(p, mxu_dtype=jnp.bfloat16):
    """Repack PyTorch-layout parameters into the kernel layouts (runs once).

    mxu_dtype: dtype of the matmul operands (weights + in-kernel activation casts
    at the dot sites).  bf16 is MXU-native on v6e/v7x and halves weight DMA; pass
    jnp.float32 for exact f32 matmuls.  Biases and all element-wise math stay f32.
    """
    n_acts = p["a2_w"].shape[1]
    assert p["conv1_w"].shape == (_C1, _C_IN, 4, 4)
    assert p["conv2_w"].shape == (_C2, _C1, 3, 3)
    assert p["v1_w"].shape == (_ENC_OUT, _HID) and p["a1_w"].shape == (_ENC_OUT, _HID)

    # conv1 (8,4,4,4) -> (8,64) matching the space-to-depth'd input:
    # column = (ki*2+kj)*16 + (c*4 + rp*2 + cp), with dy = 2*ki+rp, dx = 2*kj+cp.
    w1 = p["conv1_w"].reshape(_C1, _C_IN, 2, 2, 2, 2)        # o, c, ki, rp, kj, cp
    w1p = w1.transpose(0, 2, 4, 1, 3, 5).reshape(_C1, 4 * _S2D).astype(mxu_dtype)
    b1 = p["conv1_b"].reshape(_C1, 1).astype(jnp.float32)

    # conv2 (16,8,3,3) -> (16,72): column = (di*3+dj)*8 + c.
    w2p = (p["conv2_w"].transpose(0, 2, 3, 1)
           .reshape(_C2, _C1 * 9).astype(mxu_dtype))
    b2 = p["conv2_b"].reshape(_C2, 1).astype(jnp.float32)

    # Head layer 1 (value || advantage), repacked per conv2 channel as
    # (16, 40, 128): row s = 8*y + x with y in [0,5), x in [0,8); the x >= 5 rows
    # are the zero rows that nullify the full-width junk columns, and rows for
    # y >= 5 are dropped entirely (~37% less weight DMA than full 8x8 padding).
    wh1 = jnp.concatenate([p["v1_w"], p["a1_w"]], axis=1)    # (400, 128)
    wh1 = wh1.reshape(_C2, _V2, _V2, 2 * _HID)
    wh1 = jnp.pad(wh1, ((0, 0), (0, 0), (0, _G - _V2), (0, 0)))
    wh1p = wh1.reshape(_C2, _FPC, 2 * _HID).astype(mxu_dtype)
    bh1p = jnp.concatenate([p["v1_b"], p["a1_b"]], axis=1).astype(jnp.float32)

    # Head layer 2: block-diagonal (128, 1+n_acts): col 0 = value, cols 1.. = adv.
    wh2p = jnp.zeros((2 * _HID, 1 + n_acts), jnp.float32)
    wh2p = wh2p.at[:_HID, 0:1].set(p["v2_w"])
    wh2p = wh2p.at[_HID:, 1:].set(p["a2_w"])
    wh2p = wh2p.astype(mxu_dtype)
    bh2p = jnp.concatenate([p["v2_b"], p["a2_b"]], axis=1).astype(jnp.float32)

    return (w1p, b1, w2p, b2, wh1p, bh1p, wh2p, bh2p)


def init_params(key, n_channels=4, hidden_size=_HID, n_acts=6, enc_out=_ENC_OUT,
                zero_final=True):
    """PyTorch-layout parameters. zero_final=True mirrors _init_weights()."""
    ks = jax.random.split(key, 12)
    s = 0.05

    def rnd(k, shape):
        return s * jax.random.normal(k, shape, jnp.float32)

    p = {
        "conv1_w": rnd(ks[0], (8, n_channels, 4, 4)),
        "conv1_b": rnd(ks[1], (8,)),
        "conv2_w": rnd(ks[2], (16, 8, 3, 3)),
        "conv2_b": rnd(ks[3], (16,)),
        "v1_w": rnd(ks[4], (enc_out, hidden_size)),
        "v1_b": rnd(ks[5], (1, hidden_size)),
        "a1_w": rnd(ks[6], (enc_out, hidden_size)),
        "a1_b": rnd(ks[7], (1, hidden_size)),
    }
    if zero_final:
        p["v2_w"] = jnp.zeros((hidden_size, 1), jnp.float32)
        p["v2_b"] = jnp.zeros((1, 1), jnp.float32)
        p["a2_w"] = jnp.zeros((hidden_size, n_acts), jnp.float32)
        p["a2_b"] = jnp.zeros((1, n_acts), jnp.float32)
    else:
        p["v2_w"] = rnd(ks[8], (hidden_size, 1))
        p["v2_b"] = rnd(ks[9], (1, 1))
        p["a2_w"] = rnd(ks[10], (hidden_size, n_acts))
        p["a2_b"] = rnd(ks[11], (1, n_acts))
    return p


# ---------------------------- pure-JAX reference ----------------------------

def dddqn_reference(params, x):
    hp = jax.lax.Precision.HIGHEST

    def conv_relu(inp, w, b, stride):
        y = jax.lax.conv_general_dilated(
            inp, w, (stride, stride), "VALID",
            dimension_numbers=("NCHW", "OIHW", "NCHW"), precision=hp)
        return jax.nn.relu(y + b[None, :, None, None])

    z = conv_relu(x, params["conv1_w"], params["conv1_b"], 2)
    z = conv_relu(z, params["conv2_w"], params["conv2_b"], 1)
    zf = z.reshape(z.shape[0], -1)
    hv = jax.nn.relu(jnp.dot(zf, params["v1_w"], precision=hp) + params["v1_b"])
    v = jnp.dot(hv, params["v2_w"], precision=hp) + params["v2_b"]
    ha = jax.nn.relu(jnp.dot(zf, params["a1_w"], precision=hp) + params["a1_b"])
    a = jnp.dot(ha, params["a2_w"], precision=hp) + params["a2_b"]
    return v + (a - a.mean(axis=1, keepdims=True))


# ------------------------------------ main ------------------------------------

if __name__ == "__main__":
    key = jax.random.PRNGKey(0)
    pkey, xkey = jax.random.split(key)

    batch, n_acts = 2, 6
    x = jax.random.normal(xkey, (batch, _C_IN, _HW, _HW), jnp.float32)

    fwd = jax.jit(dddqn_forward)

    # Random final layers so the numeric check exercises the convs and both head
    # layers (the module zero-inits them, which would make q identically zero).
    params = init_params(pkey, n_acts=n_acts, zero_final=False)
    q_ref = jax.block_until_ready(dddqn_reference(params, x))

    # Check 1: exact-math packing (f32 MXU operands) against the f32 reference.
    q_f32 = jax.block_until_ready(fwd(pack_params(params, jnp.float32), x))
    assert q_f32.shape == (batch, n_acts), q_f32.shape
    assert jnp.allclose(q_f32, q_ref, atol=2e-3, rtol=2e-3), (q_f32, q_ref)

    # Check 2: default bf16 MXU operands (the fast path on v6e/v7x), f32 accumulate.
    q_bf16 = jax.block_until_ready(fwd(pack_params(params), x))
    assert jnp.allclose(q_bf16, q_ref, atol=1.5e-2, rtol=1.5e-2), (q_bf16, q_ref)

    # Check 3: the module's actual _init_weights() (zero final layers).
    params0 = init_params(pkey, n_acts=n_acts, zero_final=True)
    q0 = jax.block_until_ready(fwd(pack_params(params0, jnp.float32), x))
    assert jnp.allclose(q0, dddqn_reference(params0, x), atol=2e-3), q0

    print("KERNEL_OK")
</pallas_src>

<mosaic_0001>
module attributes {stable_mosaic.version = 11 : i64} {
  func.func @_dddqn_fused_kernel(%arg0: memref<16x128xf32, #tpu.memory_space<vmem>>, %arg1: memref<8x64xf32, #tpu.memory_space<vmem>>, %arg2: memref<8x1xf32, #tpu.memory_space<vmem>>, %arg3: memref<16x72xf32, #tpu.memory_space<vmem>>, %arg4: memref<16x1xf32, #tpu.memory_space<vmem>>, %arg5: memref<16x40x128xf32, #tpu.memory_space<vmem>>, %arg6: memref<1x128xf32, #tpu.memory_space<vmem>>, %arg7: memref<128x7xf32, #tpu.memory_space<vmem>>, %arg8: memref<1x7xf32, #tpu.memory_space<vmem>>, %arg9: memref<2x6xf32, #tpu.memory_space<vmem>>) attributes {dimension_semantics = [], scalar_prefetch = 0 : i64, scratch_operands = 0 : i64, tpu.core_type = #tpu.core_type<tc>} {
    %c0 = arith.constant 0 : index
    %c0_0 = arith.constant 0 : index
    %0 = vector.load %arg0[%c0, %c0_0] : memref<16x128xf32, #tpu.memory_space<vmem>>, vector<16x128xf32>
    %c127_i32 = arith.constant 127 : i32
    %1 = tpu.dynamic_rotate %0 by %c127_i32 dim 1 : vector<16x128xf32>, i32 -> vector<16x128xf32>
    %c120_i32 = arith.constant 120 : i32
    %2 = tpu.dynamic_rotate %0 by %c120_i32 dim 1 : vector<16x128xf32>, i32 -> vector<16x128xf32>
    %c119_i32 = arith.constant 119 : i32
    %3 = tpu.dynamic_rotate %0 by %c119_i32 dim 1 : vector<16x128xf32>, i32 -> vector<16x128xf32>
    %4 = tpu.concatenate %0, %1, %2, %3 in 0 : vector<16x128xf32>, vector<16x128xf32>, vector<16x128xf32>, vector<16x128xf32> -> vector<64x128xf32>
    %c0_1 = arith.constant 0 : index
    %c0_2 = arith.constant 0 : index
    %5 = vector.load %arg1[%c0_1, %c0_2] : memref<8x64xf32, #tpu.memory_space<vmem>>, vector<8x64xf32>
    %cst = arith.constant dense<0.000000e+00> : vector<8x128xf32>
    %6 = tpu.matmul %5, %4, %cst {dimension_numbers = #tpu.dot_dimension_numbers<[1], [0], [0], [1], [0, 0, 1, 1], [], []>} : vector<8x64xf32>, vector<64x128xf32>, vector<8x128xf32> -> vector<8x128xf32>
    %c0_3 = arith.constant 0 : index
    %c0_4 = arith.constant 0 : index
    %7 = vector.load %arg2[%c0_3, %c0_4] : memref<8x1xf32, #tpu.memory_space<vmem>>, vector<8x1xf32>
    %8 = vector.broadcast %7 : vector<8x1xf32> to vector<8x128xf32>
    %9 = arith.addf %6, %8 : vector<8x128xf32>
    %cst_5 = arith.constant 0.000000e+00 : f32
    %10 = vector.broadcast %cst_5 : f32 to vector<8x128xf32>
    %11 = arith.maximumf %9, %10 : vector<8x128xf32>
    %c127_i32_6 = arith.constant 127 : i32
    %12 = tpu.dynamic_rotate %11 by %c127_i32_6 dim 1 : vector<8x128xf32>, i32 -> vector<8x128xf32>
    %c126_i32 = arith.constant 126 : i32
    %13 = tpu.dynamic_rotate %11 by %c126_i32 dim 1 : vector<8x128xf32>, i32 -> vector<8x128xf32>
    %c120_i32_7 = arith.constant 120 : i32
    %14 = tpu.dynamic_rotate %11 by %c120_i32_7 dim 1 : vector<8x128xf32>, i32 -> vector<8x128xf32>
    %c119_i32_8 = arith.constant 119 : i32
    %15 = tpu.dynamic_rotate %11 by %c119_i32_8 dim 1 : vector<8x128xf32>, i32 -> vector<8x128xf32>
    %c118_i32 = arith.constant 118 : i32
    %16 = tpu.dynamic_rotate %11 by %c118_i32 dim 1 : vector<8x128xf32>, i32 -> vector<8x128xf32>
    %c112_i32 = arith.constant 112 : i32
    %17 = tpu.dynamic_rotate %11 by %c112_i32 dim 1 : vector<8x128xf32>, i32 -> vector<8x128xf32>
    %c111_i32 = arith.constant 111 : i32
    %18 = tpu.dynamic_rotate %11 by %c111_i32 dim 1 : vector<8x128xf32>, i32 -> vector<8x128xf32>
    %c110_i32 = arith.constant 110 : i32
    %19 = tpu.dynamic_rotate %11 by %c110_i32 dim 1 : vector<8x128xf32>, i32 -> vector<8x128xf32>
    %20 = tpu.concatenate %11, %12, %13, %14, %15, %16, %17, %18, %19 in 0 : vector<8x128xf32>, vector<8x128xf32>, vector<8x128xf32>, vector<8x128xf32>, vector<8x128xf32>, vector<8x128xf32>, vector<8x128xf32>, vector<8x128xf32>, vector<8x128xf32> -> vector<72x128xf32>
    %c0_9 = arith.constant 0 : index
    %c0_10 = arith.constant 0 : index
    %21 = vector.load %arg3[%c0_9, %c0_10] : memref<16x72xf32, #tpu.memory_space<vmem>>, vector<16x72xf32>
    %cst_11 = arith.constant dense<0.000000e+00> : vector<16x128xf32>
    %22 = tpu.matmul %21, %20, %cst_11 {dimension_numbers = #tpu.dot_dimension_numbers<[1], [0], [0], [1], [0, 0, 1, 1], [], []>} : vector<16x72xf32>, vector<72x128xf32>, vector<16x128xf32> -> vector<16x128xf32>
    %c0_12 = arith.constant 0 : index
    %c0_13 = arith.constant 0 : index
    %23 = vector.load %arg4[%c0_12, %c0_13] : memref<16x1xf32, #tpu.memory_space<vmem>>, vector<16x1xf32>
    %24 = vector.broadcast %23 : vector<16x1xf32> to vector<16x128xf32>
    %25 = arith.addf %22, %24 : vector<16x128xf32>
    %cst_14 = arith.constant 0.000000e+00 : f32
    %26 = vector.broadcast %cst_14 : f32 to vector<16x128xf32>
    %27 = arith.maximumf %25, %26 : vector<16x128xf32>
    %cst_15 = arith.constant 0.000000e+00 : f32
    %28 = vector.broadcast %cst_15 : f32 to vector<2x128xf32>
    %29 = vector.extract_strided_slice %27 {offsets = [0, 0], sizes = [1, 40], strides = [1, 1]} : vector<16x128xf32> to vector<1x40xf32>
    %30 = vector.extract_strided_slice %27 {offsets = [0, 64], sizes = [1, 40], strides = [1, 1]} : vector<16x128xf32> to vector<1x40xf32>
    %31 = tpu.concatenate %29, %30 in 0 : vector<1x40xf32>, vector<1x40xf32> -> vector<2x40xf32>
    %c0_16 = arith.constant 0 : index
    %c0_17 = arith.constant 0 : index
    %c0_18 = arith.constant 0 : index
    %32 = vector.load %arg5[%c0_16, %c0_17, %c0_18] : memref<16x40x128xf32, #tpu.memory_space<vmem>>, vector<1x40x128xf32>
    %33 = vector.shape_cast %32 : vector<1x40x128xf32> to vector<40x128xf32>
    %cst_19 = arith.constant dense<0.000000e+00> : vector<2x128xf32>
    %34 = tpu.matmul %31, %33, %cst_19 {dimension_numbers = #tpu.dot_dimension_numbers<[1], [0], [0], [1], [0, 0, 1, 1], [], []>} : vector<2x40xf32>, vector<40x128xf32>, vector<2x128xf32> -> vector<2x128xf32>
    %35 = arith.addf %28, %34 : vector<2x128xf32>
    %36 = vector.extract_strided_slice %27 {offsets = [1, 0], sizes = [1, 40], strides = [1, 1]} : vector<16x128xf32> to vector<1x40xf32>
    %37 = vector.extract_strided_slice %27 {offsets = [1, 64], sizes = [1, 40], strides = [1, 1]} : vector<16x128xf32> to vector<1x40xf32>
    %38 = tpu.concatenate %36, %37 in 0 : vector<1x40xf32>, vector<1x40xf32> -> vector<2x40xf32>
    %c1 = arith.constant 1 : index
    %c0_20 = arith.constant 0 : index
    %c0_21 = arith.constant 0 : index
    %39 = vector.load %arg5[%c1, %c0_20, %c0_21] : memref<16x40x128xf32, #tpu.memory_space<vmem>>, vector<1x40x128xf32>
    %40 = vector.shape_cast %39 : vector<1x40x128xf32> to vector<40x128xf32>
    %cst_22 = arith.constant dense<0.000000e+00> : vector<2x128xf32>
    %41 = tpu.matmul %38, %40, %cst_22 {dimension_numbers = #tpu.dot_dimension_numbers<[1], [0], [0], [1], [0, 0, 1, 1], [], []>} : vector<2x40xf32>, vector<40x128xf32>, vector<2x128xf32> -> vector<2x128xf32>
    %42 = arith.addf %35, %41 : vector<2x128xf32>
    %43 = vector.extract_strided_slice %27 {offsets = [2, 0], sizes = [1, 40], strides = [1, 1]} : vector<16x128xf32> to vector<1x40xf32>
    %44 = vector.extract_strided_slice %27 {offsets = [2, 64], sizes = [1, 40], strides = [1, 1]} : vector<16x128xf32> to vector<1x40xf32>
    %45 = tpu.concatenate %43, %44 in 0 : vector<1x40xf32>, vector<1x40xf32> -> vector<2x40xf32>
    %c2 = arith.constant 2 : index
    %c0_23 = arith.constant 0 : index
    %c0_24 = arith.constant 0 : index
    %46 = vector.load %arg5[%c2, %c0_23, %c0_24] : memref<16x40x128xf32, #tpu.memory_space<vmem>>, vector<1x40x128xf32>
    %47 = vector.shape_cast %46 : vector<1x40x128xf32> to vector<40x128xf32>
    %cst_25 = arith.constant dense<0.000000e+00> : vector<2x128xf32>
    %48 = tpu.matmul %45, %47, %cst_25 {dimension_numbers = #tpu.dot_dimension_numbers<[1], [0], [0], [1], [0, 0, 1, 1], [], []>} : vector<2x40xf32>, vector<40x128xf32>, vector<2x128xf32> -> vector<2x128xf32>
    %49 = arith.addf %42, %48 : vector<2x128xf32>
    %50 = vector.extract_strided_slice %27 {offsets = [3, 0], sizes = [1, 40], strides = [1, 1]} : vector<16x128xf32> to vector<1x40xf32>
    %51 = vector.extract_strided_slice %27 {offsets = [3, 64], sizes = [1, 40], strides = [1, 1]} : vector<16x128xf32> to vector<1x40xf32>
    %52 = tpu.concatenate %50, %51 in 0 : vector<1x40xf32>, vector<1x40xf32> -> vector<2x40xf32>
    %c3 = arith.constant 3 : index
    %c0_26 = arith.constant 0 : index
    %c0_27 = arith.constant 0 : index
    %53 = vector.load %arg5[%c3, %c0_26, %c0_27] : memref<16x40x128xf32, #tpu.memory_space<vmem>>, vector<1x40x128xf32>
    %54 = vector.shape_cast %53 : vector<1x40x128xf32> to vector<40x128xf32>
    %cst_28 = arith.constant dense<0.000000e+00> : vector<2x128xf32>
    %55 = tpu.matmul %52, %54, %cst_28 {dimension_numbers = #tpu.dot_dimension_numbers<[1], [0], [0], [1], [0, 0, 1, 1], [], []>} : vector<2x40xf32>, vector<40x128xf32>, vector<2x128xf32> -> vector<2x128xf32>
    %56 = arith.addf %49, %55 : vector<2x128xf32>
    %57 = vector.extract_strided_slice %27 {offsets = [4, 0], sizes = [1, 40], strides = [1, 1]} : vector<16x128xf32> to vector<1x40xf32>
    %58 = vector.extract_strided_slice %27 {offsets = [4, 64], sizes = [1, 40], strides = [1, 1]} : vector<16x128xf32> to vector<1x40xf32>
    %59 = tpu.concatenate %57, %58 in 0 : vector<1x40xf32>, vector<1x40xf32> -> vector<2x40xf32>
    %c4 = arith.constant 4 : index
    %c0_29 = arith.constant 0 : index
    %c0_30 = arith.constant 0 : index
    %60 = vector.load %arg5[%c4, %c0_29, %c0_30] : memref<16x40x128xf32, #tpu.memory_space<vmem>>, vector<1x40x128xf32>
    %61 = vector.shape_cast %60 : vector<1x40x128xf32> to vector<40x128xf32>
    %cst_31 = arith.constant dense<0.000000e+00> : vector<2x128xf32>
    %62 = tpu.matmul %59, %61, %cst_31 {dimension_numbers = #tpu.dot_dimension_numbers<[1], [0], [0], [1], [0, 0, 1, 1], [], []>} : vector<2x40xf32>, vector<40x128xf32>, vector<2x128xf32> -> vector<2x128xf32>
    %63 = arith.addf %56, %62 : vector<2x128xf32>
    %64 = vector.extract_strided_slice %27 {offsets = [5, 0], sizes = [1, 40], strides = [1, 1]} : vector<16x128xf32> to vector<1x40xf32>
    %65 = vector.extract_strided_slice %27 {offsets = [5, 64], sizes = [1, 40], strides = [1, 1]} : vector<16x128xf32> to vector<1x40xf32>
    %66 = tpu.concatenate %64, %65 in 0 : vector<1x40xf32>, vector<1x40xf32> -> vector<2x40xf32>
    %c5 = arith.constant 5 : index
    %c0_32 = arith.constant 0 : index
    %c0_33 = arith.constant 0 : index
    %67 = vector.load %arg5[%c5, %c0_32, %c0_33] : memref<16x40x128xf32, #tpu.memory_space<vmem>>, vector<1x40x128xf32>
    %68 = vector.shape_cast %67 : vector<1x40x128xf32> to vector<40x128xf32>
    %cst_34 = arith.constant dense<0.000000e+00> : vector<2x128xf32>
    %69 = tpu.matmul %66, %68, %cst_34 {dimension_numbers = #tpu.dot_dimension_numbers<[1], [0], [0], [1], [0, 0, 1, 1], [], []>} : vector<2x40xf32>, vector<40x128xf32>, vector<2x128xf32> -> vector<2x128xf32>
    %70 = arith.addf %63, %69 : vector<2x128xf32>
    %71 = vector.extract_strided_slice %27 {offsets = [6, 0], sizes = [1, 40], strides = [1, 1]} : vector<16x128xf32> to vector<1x40xf32>
    %72 = vector.extract_strided_slice %27 {offsets = [6, 64], sizes = [1, 40], strides = [1, 1]} : vector<16x128xf32> to vector<1x40xf32>
    %73 = tpu.concatenate %71, %72 in 0 : vector<1x40xf32>, vector<1x40xf32> -> vector<2x40xf32>
    %c6 = arith.constant 6 : index
    %c0_35 = arith.constant 0 : index
    %c0_36 = arith.constant 0 : index
    %74 = vector.load %arg5[%c6, %c0_35, %c0_36] : memref<16x40x128xf32, #tpu.memory_space<vmem>>, vector<1x40x128xf32>
    %75 = vector.shape_cast %74 : vector<1x40x128xf32> to vector<40x128xf32>
    %cst_37 = arith.constant dense<0.000000e+00> : vector<2x128xf32>
    %76 = tpu.matmul %73, %75, %cst_37 {dimension_numbers = #tpu.dot_dimension_numbers<[1], [0], [0], [1], [0, 0, 1, 1], [], []>} : vector<2x40xf32>, vector<40x128xf32>, vector<2x128xf32> -> vector<2x128xf32>
    %77 = arith.addf %70, %76 : vector<2x128xf32>
    %78 = vector.extract_strided_slice %27 {offsets = [7, 0], sizes = [1, 40], strides = [1, 1]} : vector<16x128xf32> to vector<1x40xf32>
    %79 = vector.extract_strided_slice %27 {offsets = [7, 64], sizes = [1, 40], strides = [1, 1]} : vector<16x128xf32> to vector<1x40xf32>
    %80 = tpu.concatenate %78, %79 in 0 : vector<1x40xf32>, vector<1x40xf32> -> vector<2x40xf32>
    %c7 = arith.constant 7 : index
    %c0_38 = arith.constant 0 : index
    %c0_39 = arith.constant 0 : index
    %81 = vector.load %arg5[%c7, %c0_38, %c0_39] : memref<16x40x128xf32, #tpu.memory_space<vmem>>, vector<1x40x128xf32>
    %82 = vector.shape_cast %81 : vector<1x40x128xf32> to vector<40x128xf32>
    %cst_40 = arith.constant dense<0.000000e+00> : vector<2x128xf32>
    %83 = tpu.matmul %80, %82, %cst_40 {dimension_numbers = #tpu.dot_dimension_numbers<[1], [0], [0], [1], [0, 0, 1, 1], [], []>} : vector<2x40xf32>, vector<40x128xf32>, vector<2x128xf32> -> vector<2x128xf32>
    %84 = arith.addf %77, %83 : vector<2x128xf32>
    %85 = vector.extract_strided_slice %27 {offsets = [8, 0], sizes = [1, 40], strides = [1, 1]} : vector<16x128xf32> to vector<1x40xf32>
    %86 = vector.extract_strided_slice %27 {offsets = [8, 64], sizes = [1, 40], strides = [1, 1]} : vector<16x128xf32> to vector<1x40xf32>
    %87 = tpu.concatenate %85, %86 in 0 : vector<1x40xf32>, vector<1x40xf32> -> vector<2x40xf32>
    %c8 = arith.constant 8 : index
    %c0_41 = arith.constant 0 : index
    %c0_42 = arith.constant 0 : index
    %88 = vector.load %arg5[%c8, %c0_41, %c0_42] : memref<16x40x128xf32, #tpu.memory_space<vmem>>, vector<1x40x128xf32>
    %89 = vector.shape_cast %88 : vector<1x40x128xf32> to vector<40x128xf32>
    %cst_43 = arith.constant dense<0.000000e+00> : vector<2x128xf32>
    %90 = tpu.matmul %87, %89, %cst_43 {dimension_numbers = #tpu.dot_dimension_numbers<[1], [0], [0], [1], [0, 0, 1, 1], [], []>} : vector<2x40xf32>, vector<40x128xf32>, vector<2x128xf32> -> vector<2x128xf32>
    %91 = arith.addf %84, %90 : vector<2x128xf32>
    %92 = vector.extract_strided_slice %27 {offsets = [9, 0], sizes = [1, 40], strides = [1, 1]} : vector<16x128xf32> to vector<1x40xf32>
    %93 = vector.extract_strided_slice %27 {offsets = [9, 64], sizes = [1, 40], strides = [1, 1]} : vector<16x128xf32> to vector<1x40xf32>
    %94 = tpu.concatenate %92, %93 in 0 : vector<1x40xf32>, vector<1x40xf32> -> vector<2x40xf32>
    %c9 = arith.constant 9 : index
    %c0_44 = arith.constant 0 : index
    %c0_45 = arith.constant 0 : index
    %95 = vector.load %arg5[%c9, %c0_44, %c0_45] : memref<16x40x128xf32, #tpu.memory_space<vmem>>, vector<1x40x128xf32>
    %96 = vector.shape_cast %95 : vector<1x40x128xf32> to vector<40x128xf32>
    %cst_46 = arith.constant dense<0.000000e+00> : vector<2x128xf32>
    %97 = tpu.matmul %94, %96, %cst_46 {dimension_numbers = #tpu.dot_dimension_numbers<[1], [0], [0], [1], [0, 0, 1, 1], [], []>} : vector<2x40xf32>, vector<40x128xf32>, vector<2x128xf32> -> vector<2x128xf32>
    %98 = arith.addf %91, %97 : vector<2x128xf32>
    %99 = vector.extract_strided_slice %27 {offsets = [10, 0], sizes = [1, 40], strides = [1, 1]} : vector<16x128xf32> to vector<1x40xf32>
    %100 = vector.extract_strided_slice %27 {offsets = [10, 64], sizes = [1, 40], strides = [1, 1]} : vector<16x128xf32> to vector<1x40xf32>
    %101 = tpu.concatenate %99, %100 in 0 : vector<1x40xf32>, vector<1x40xf32> -> vector<2x40xf32>
    %c10 = arith.constant 10 : index
    %c0_47 = arith.constant 0 : index
    %c0_48 = arith.constant 0 : index
    %102 = vector.load %arg5[%c10, %c0_47, %c0_48] : memref<16x40x128xf32, #tpu.memory_space<vmem>>, vector<1x40x128xf32>
    %103 = vector.shape_cast %102 : vector<1x40x128xf32> to vector<40x128xf32>
    %cst_49 = arith.constant dense<0.000000e+00> : vector<2x128xf32>
    %104 = tpu.matmul %101, %103, %cst_49 {dimension_numbers = #tpu.dot_dimension_numbers<[1], [0], [0], [1], [0, 0, 1, 1], [], []>} : vector<2x40xf32>, vector<40x128xf32>, vector<2x128xf32> -> vector<2x128xf32>
    %105 = arith.addf %98, %104 : vector<2x128xf32>
    %106 = vector.extract_strided_slice %27 {offsets = [11, 0], sizes = [1, 40], strides = [1, 1]} : vector<16x128xf32> to vector<1x40xf32>
    %107 = vector.extract_strided_slice %27 {offsets = [11, 64], sizes = [1, 40], strides = [1, 1]} : vector<16x128xf32> to vector<1x40xf32>
    %108 = tpu.concatenate %106, %107 in 0 : vector<1x40xf32>, vector<1x40xf32> -> vector<2x40xf32>
    %c11 = arith.constant 11 : index
    %c0_50 = arith.constant 0 : index
    %c0_51 = arith.constant 0 : index
    %109 = vector.load %arg5[%c11, %c0_50, %c0_51] : memref<16x40x128xf32, #tpu.memory_space<vmem>>, vector<1x40x128xf32>
    %110 = vector.shape_cast %109 : vector<1x40x128xf32> to vector<40x128xf32>
    %cst_52 = arith.constant dense<0.000000e+00> : vector<2x128xf32>
    %111 = tpu.matmul %108, %110, %cst_52 {dimension_numbers = #tpu.dot_dimension_numbers<[1], [0], [0], [1], [0, 0, 1, 1], [], []>} : vector<2x40xf32>, vector<40x128xf32>, vector<2x128xf32> -> vector<2x128xf32>
    %112 = arith.addf %105, %111 : vector<2x128xf32>
    %113 = vector.extract_strided_slice %27 {offsets = [12, 0], sizes = [1, 40], strides = [1, 1]} : vector<16x128xf32> to vector<1x40xf32>
    %114 = vector.extract_strided_slice %27 {offsets = [12, 64], sizes = [1, 40], strides = [1, 1]} : vector<16x128xf32> to vector<1x40xf32>
    %115 = tpu.concatenate %113, %114 in 0 : vector<1x40xf32>, vector<1x40xf32> -> vector<2x40xf32>
    %c12 = arith.constant 12 : index
    %c0_53 = arith.constant 0 : index
    %c0_54 = arith.constant 0 : index
    %116 = vector.load %arg5[%c12, %c0_53, %c0_54] : memref<16x40x128xf32, #tpu.memory_space<vmem>>, vector<1x40x128xf32>
    %117 = vector.shape_cast %116 : vector<1x40x128xf32> to vector<40x128xf32>
    %cst_55 = arith.constant dense<0.000000e+00> : vector<2x128xf32>
    %118 = tpu.matmul %115, %117, %cst_55 {dimension_numbers = #tpu.dot_dimension_numbers<[1], [0], [0], [1], [0, 0, 1, 1], [], []>} : vector<2x40xf32>, vector<40x128xf32>, vector<2x128xf32> -> vector<2x128xf32>
    %119 = arith.addf %112, %118 : vector<2x128xf32>
    %120 = vector.extract_strided_slice %27 {offsets = [13, 0], sizes = [1, 40], strides = [1, 1]} : vector<16x128xf32> to vector<1x40xf32>
    %121 = vector.extract_strided_slice %27 {offsets = [13, 64], sizes = [1, 40], strides = [1, 1]} : vector<16x128xf32> to vector<1x40xf32>
    %122 = tpu.concatenate %120, %121 in 0 : vector<1x40xf32>, vector<1x40xf32> -> vector<2x40xf32>
    %c13 = arith.constant 13 : index
    %c0_56 = arith.constant 0 : index
    %c0_57 = arith.constant 0 : index
    %123 = vector.load %arg5[%c13, %c0_56, %c0_57] : memref<16x40x128xf32, #tpu.memory_space<vmem>>, vector<1x40x128xf32>
    %124 = vector.shape_cast %123 : vector<1x40x128xf32> to vector<40x128xf32>
    %cst_58 = arith.constant dense<0.000000e+00> : vector<2x128xf32>
    %125 = tpu.matmul %122, %124, %cst_58 {dimension_numbers = #tpu.dot_dimension_numbers<[1], [0], [0], [1], [0, 0, 1, 1], [], []>} : vector<2x40xf32>, vector<40x128xf32>, vector<2x128xf32> -> vector<2x128xf32>
    %126 = arith.addf %119, %125 : vector<2x128xf32>
    %127 = vector.extract_strided_slice %27 {offsets = [14, 0], sizes = [1, 40], strides = [1, 1]} : vector<16x128xf32> to vector<1x40xf32>
    %128 = vector.extract_strided_slice %27 {offsets = [14, 64], sizes = [1, 40], strides = [1, 1]} : vector<16x128xf32> to vector<1x40xf32>
    %129 = tpu.concatenate %127, %128 in 0 : vector<1x40xf32>, vector<1x40xf32> -> vector<2x40xf32>
    %c14 = arith.constant 14 : index
    %c0_59 = arith.constant 0 : index
    %c0_60 = arith.constant 0 : index
    %130 = vector.load %arg5[%c14, %c0_59, %c0_60] : memref<16x40x128xf32, #tpu.memory_space<vmem>>, vector<1x40x128xf32>
    %131 = vector.shape_cast %130 : vector<1x40x128xf32> to vector<40x128xf32>
    %cst_61 = arith.constant dense<0.000000e+00> : vector<2x128xf32>
    %132 = tpu.matmul %129, %131, %cst_61 {dimension_numbers = #tpu.dot_dimension_numbers<[1], [0], [0], [1], [0, 0, 1, 1], [], []>} : vector<2x40xf32>, vector<40x128xf32>, vector<2x128xf32> -> vector<2x128xf32>
    %133 = arith.addf %126, %132 : vector<2x128xf32>
    %134 = vector.extract_strided_slice %27 {offsets = [15, 0], sizes = [1, 40], strides = [1, 1]} : vector<16x128xf32> to vector<1x40xf32>
    %135 = vector.extract_strided_slice %27 {offsets = [15, 64], sizes = [1, 40], strides = [1, 1]} : vector<16x128xf32> to vector<1x40xf32>
    %136 = tpu.concatenate %134, %135 in 0 : vector<1x40xf32>, vector<1x40xf32> -> vector<2x40xf32>
    %c15 = arith.constant 15 : index
    %c0_62 = arith.constant 0 : index
    %c0_63 = arith.constant 0 : index
    %137 = vector.load %arg5[%c15, %c0_62, %c0_63] : memref<16x40x128xf32, #tpu.memory_space<vmem>>, vector<1x40x128xf32>
    %138 = vector.shape_cast %137 : vector<1x40x128xf32> to vector<40x128xf32>
    %cst_64 = arith.constant dense<0.000000e+00> : vector<2x128xf32>
    %139 = tpu.matmul %136, %138, %cst_64 {dimension_numbers = #tpu.dot_dimension_numbers<[1], [0], [0], [1], [0, 0, 1, 1], [], []>} : vector<2x40xf32>, vector<40x128xf32>, vector<2x128xf32> -> vector<2x128xf32>
    %140 = arith.addf %133, %139 : vector<2x128xf32>
    %c0_65 = arith.constant 0 : index
    %c0_66 = arith.constant 0 : index
    %141 = vector.load %arg6[%c0_65, %c0_66] : memref<1x128xf32, #tpu.memory_space<vmem>>, vector<1x128xf32>
    %142 = vector.broadcast %141 : vector<1x128xf32> to vector<2x128xf32>
    %143 = arith.addf %140, %142 : vector<2x128xf32>
    %cst_67 = arith.constant 0.000000e+00 : f32
    %144 = vector.broadcast %cst_67 : f32 to vector<2x128xf32>
    %145 = arith.maximumf %143, %144 : vector<2x128xf32>
    %c0_68 = arith.constant 0 : index
    %c0_69 = arith.constant 0 : index
    %146 = vector.load %arg7[%c0_68, %c0_69] : memref<128x7xf32, #tpu.memory_space<vmem>>, vector<128x7xf32>
    %cst_70 = arith.constant dense<0.000000e+00> : vector<2x7xf32>
    %147 = tpu.matmul %145, %146, %cst_70 {dimension_numbers = #tpu.dot_dimension_numbers<[1], [0], [0], [1], [0, 0, 1, 1], [], []>} : vector<2x128xf32>, vector<128x7xf32>, vector<2x7xf32> -> vector<2x7xf32>
    %c0_71 = arith.constant 0 : index
    %c0_72 = arith.constant 0 : index
    %148 = vector.load %arg8[%c0_71, %c0_72] : memref<1x7xf32, #tpu.memory_space<vmem>>, vector<1x7xf32>
    %149 = vector.broadcast %148 : vector<1x7xf32> to vector<2x7xf32>
    %150 = arith.addf %147, %149 : vector<2x7xf32>
    %151 = vector.extract_strided_slice %150 {offsets = [0, 0], sizes = [2, 1], strides = [1, 1]} : vector<2x7xf32> to vector<2x1xf32>
    %152 = vector.extract_strided_slice %150 {offsets = [0, 1], sizes = [2, 6], strides = [1, 1]} : vector<2x7xf32> to vector<2x6xf32>
    %cst_73 = arith.constant dense<0.000000e+00> : vector<2xf32>
    %153 = vector.multi_reduction <add>, %152, %cst_73 [1] : vector<2x6xf32> to vector<2xf32>
    %154 = vector.shape_cast %153 : vector<2xf32> to vector<2x1xf32>
    %cst_74 = arith.constant 6.000000e+00 : f32
    %155 = vector.broadcast %cst_74 : f32 to vector<2x1xf32>
    %156 = arith.divf %154, %155 : vector<2x1xf32>
    %157 = vector.broadcast %156 : vector<2x1xf32> to vector<2x6xf32>
    %158 = arith.subf %152, %157 : vector<2x6xf32>
    %159 = vector.broadcast %151 : vector<2x1xf32> to vector<2x6xf32>
    %160 = arith.addf %159, %158 : vector<2x6xf32>
    %c0_75 = arith.constant 0 : index
    %c0_76 = arith.constant 0 : index
    %161 = vector.load %arg9[%c0_75, %c0_76] : memref<2x6xf32, #tpu.memory_space<vmem>>, vector<2x6xf32>
    tpu.vector_store %arg9[%c0_75, %c0_76], %160 {strides = array<i32>} : memref<2x6xf32, #tpu.memory_space<vmem>>, vector<2x6xf32>,
    return
  }
}

</mosaic_0001>

<bundles_post_ra>
// kernel: dddqn_forward.1
= control target key start
LH: loop header
LB: loop body
LE: loop exit
PB: predicated region body
PF: predicated region fallthrough
CT: control target
= control target key end

     0   :  { %s2302_s11 = smov 119   ;;  %s2303_s12 = smov 120   ;;  %s2957_s0 = inlined_call_operand.vmem [shape: f32[16,128], index: 0, kind: input, shape index: {}]   ;;  %s2958_s1 = inlined_call_operand.vmem [shape: f32[8,64], index: 1, kind: input, shape index: {}]   ;;  %s2959_s2 = inlined_call_operand.vmem [shape: f32[8,1], index: 2, kind: input, shape index: {}]   ;;  %s2960_s3 = inlined_call_operand.vmem [shape: f32[16,72], index: 3, kind: input, shape index: {}]   ;;  %s2961_s4 = inlined_call_operand.vmem [shape: f32[16,1], index: 4, kind: input, shape index: {}]   ;;  %s2962_s5 = inlined_call_operand.vmem [shape: f32[16,40,128], index: 5, kind: input, shape index: {}]   ;;  %s2963_s6 = inlined_call_operand.vmem [shape: f32[1,128], index: 6, kind: input, shape index: {}]   ;;  %s2964_s7 = inlined_call_operand.vmem [shape: f32[128,7], index: 7, kind: input, shape index: {}]   ;;  %s2965_s8 = inlined_call_operand.vmem [shape: f32[1,7], index: 8, kind: input, shape index: {}]   ;;  %s2966_s9 = inlined_call_operand.hbm [shape: f32[2,6], index: 9, kind: output, shape index: {}]  }
   0x1   :  { %v34_v0 = vld [vmem:[%s2957_s0 + $0x8] sm:$0xff] }
   0x2   :  { %45 = vrot.lane.b32.xlu0 %v34_v0, %s2302_s11  ;;  %41 = vrot.lane.b32.xlu1 %v34_v0, %s2303_s12 }
   0x3   :  { %14 = vsyncpa [#allocation3], 0  ;;  %v33_v1 = vld [vmem:[%s2957_s0] sm:$0xff]  ;;  %v2304_v2 = vmov 0.0   ;;  %vm2305_vm0 = vmmov 0   ;;  %v2306_v3 = vmov 0  }
   0x4   :  { %1982 = vmatprep.subr.mxu1 %v2304_v2  ;;  %2022 = vmatprep.subr.mxu0 %v2304_v2  ;;  %s2307_s0 = smov 127   ;;  %v48_v4 = vld [vmem:[%s2959_s2] sm:$0xff]  ;;  %vm54_vm1 = vcmask 523264   ;;  %s2308_s18 = smov 112   ;;  %vm159_vm2 = vcmask 588800   ;;  %v148_v19 = vld [vmem:[%s2961_s4 + $0x8] sm:$0xff] }
   0x5   :  { %1998 = vmatprep.mubr.msk.f32.mxu1 %vm2305_vm0, %v2304_v2  ;;  %2032 = vmatprep.mubr.msk.f32.mxu0 %vm2305_vm0, %v2304_v2  ;;  %v47_v11 = vld [vmem:[%s2958_s1] sm:$0xff]  ;;  %s2309_s19 = smov 110   ;;  %s2310_s20 = smov 111   ;;  %v146_v28 = vld [vmem:[%s2960_s3 + $0x8] sm:$0xff]  ;;  %v253_v32 = vld [vmem:[%s2962_s5 + $0x18] sm:$0xff]  ;;  %vm248_vm3 = vcmask 1040384  }
   0x6   :  { %43 = vrot.lane.b32.xlu0 %v33_v1, %s2302_s11  ;;  %39 = vrot.lane.b32.xlu1 %v33_v1, %s2303_s12  ;;  %v145_v17 = vld [vmem:[%s2960_s3] sm:$0xff]  ;;  %s2311_s22 = smov 126   ;;  %s2312_s23 = smov 118   ;;  %v1760_v29 = vld [vmem:[%s2962_s5 + $0x48] sm:$0xff]  ;;  %vm267_vm4 = vcmask 326656   ;;  %vm1722_vm5 = vcmask 41984  }
   0x7   :  { %2278 = vset.pattern.permute.xlu0 %v2306_v3  ;;  %2279 = vset.pattern.permute.xlu1 %v2306_v3  ;;  %v147_v18 = vld [vmem:[%s2961_s4] sm:$0xff]  ;;  %v1758_v33 = vld [vmem:[%s2962_s5 + $0x38] sm:$0xff]  ;;  %v252_v34 = vld [vmem:[%s2962_s5 + $0x10] sm:$0xff]  ;;  %s2313_s25 = smov 64  }
   0x8   :  { %v1759_v30 = vld [vmem:[%s2962_s5 + $0x40] sm:$0xff]  ;;  %2023 = vmatpush3.msra.mxu0 %v1760_v29  ;;  %v1757_v35 = vld [vmem:[%s2962_s5 + $0x30] sm:$0xff]  ;;  %v251_v36 = vld [vmem:[%s2962_s5 + $0x8] sm:$0xff] }
   0x9   :  { %v254_v31 = vld [vmem:[%s2962_s5 + $0x20] sm:$0xff]  ;;  %2024 = vmatprep.subr.mxu0 %v2304_v2  ;;  %v1756_v37 = vld [vmem:[%s2962_s5 + $0x28] sm:$0xff]  ;;  %v1767_v62 = vld [vmem:[%s2962_s5 + $0x70] sm:$0xff] }
   0xa   :  { %37 = vrot.lane.b32.xlu0 %v34_v0, %s2307_s0  ;;  %35 = vrot.lane.b32.xlu1 %v33_v1, %s2307_s0  ;;  %v250_v38 = vld [vmem:[%s2962_s5] sm:$0xff]  ;;  %v1773_v3 = vld [vmem:[%s2962_s5 + $0x98] sm:$0xff] }
   0xb   :  { %2025 = vmatpush3.msra.mxu0 %v1759_v30  ;;  %v1791_v29 = vld [vmem:[%s2962_s5 + $0x110] sm:$0xff]  ;;  %v1790_v30 = vld [vmem:[%s2962_s5 + $0x108] sm:$0xff] }
   0xc   :  { %2026 = vmatprep.subr.mxu0 %v2304_v2 }
   0xd   :  { %2027 = vmatpush3.msra.mxu0 %v1758_v33  ;;  %v1789_v33 = vld [vmem:[%s2962_s5 + $0x100] sm:$0xff] }
   0xe   :  { %51 = vperm.xlu0 %2278, %v48_v4   ;;  %2028 = vmatprep.subr.mxu0 %v2304_v2 }
   0xf   :  { %2029 = vmatpush3.msra.mxu0 %v1757_v35  ;;  %v1788_v35 = vld [vmem:[%s2962_s5 + $0xf8] sm:$0xff] }
  0x10   :  { %2030 = vmatprep.subr.mxu0 %v2304_v2 }
  0x11   :  { %2031 = vmatpush3.msra.mxu0 %v1756_v37  ;;  %v1787_v37 = vld [vmem:[%s2962_s5 + $0xf0] sm:$0xff] }
  0x12   :  { %2048 = vmatprep.subr.mxu0 %v2304_v2 }
  0x74   :  { %v46_v5 = vpop.permute.xlu0 %45  ;;  %v42_v6 = vpop.permute.xlu1 %41 }
  0x75   :  { %1983 = vmatpush3.msra.mxu1 %v46_v5  ;;  %v1765_v5 = vld [vmem:[%s2962_s5 + $0x60] sm:$0xff] }
  0x76   :  { %1984 = vmatprep.subr.mxu1 %v2304_v2 }
  0x78   :  { %v44_v7 = vpop.permute.xlu0 %43  ;;  %v40_v8 = vpop.permute.xlu1 %39 }
  0x79   :  { %1985 = vmatpush3.msra.mxu1 %v44_v7  ;;  %v1764_v7 = vld [vmem:[%s2962_s5 + $0x58] sm:$0xff] }
  0x7a   :  { %1986 = vmatprep.subr.mxu1 %v2304_v2 }
  0x7b   :  { %1987 = vmatpush3.msra.mxu1 %v42_v6  ;;  %v1772_v6 = vld [vmem:[%s2962_s5 + $0x90] sm:$0xff] }
  0x7c   :  { %1988 = vmatprep.subr.mxu1 %v2304_v2  ;;  %v38_v9 = vpop.permute.xlu0 %37  ;;  %v36_v10 = vpop.permute.xlu1 %35 }
  0x7d   :  { %1989 = vmatpush3.msra.mxu1 %v40_v8  ;;  %v1771_v8 = vld [vmem:[%s2962_s5 + $0x88] sm:$0xff] }
  0x7e   :  { %1990 = vmatprep.subr.mxu1 %v2304_v2 }
  0x7f   :  { %1991 = vmatpush3.msra.mxu1 %v38_v9 }
  0x80   :  { %1992 = vmatprep.subr.mxu1 %v2304_v2 }
  0x81   :  { %1993 = vmatpush3.msra.mxu1 %v36_v10  ;;  %v1763_v10 = vld [vmem:[%s2962_s5 + $0x50] sm:$0xff] }
  0x82   :  { %1994 = vmatprep.subr.mxu1 %v2304_v2 }
  0x83   :  { %1995 = vmatpush3.msra.mxu1 %v34_v0 }
  0x84   :  { %1996 = vmatprep.subr.mxu1 %v2304_v2 }
  0x85   :  { %1997 = vmatpush3.msra.mxu1 %v33_v1  ;;  %v1766_v1 = vld [vmem:[%s2962_s5 + $0x68] sm:$0xff] }
  0x86   :  { %1999 = vmatmul.mubr.msk.f32.vlgmr.msra.gmra.mxu1 %vm54_vm1, %v47_v11  ;;  %v1770_v11 = vld [vmem:[%s2962_s5 + $0x80] sm:$0xff] }
  0x87   :  { %2019 = vmatprep.mubr.msk.f32.mxu1 %vm159_vm2, %v145_v17 }
  0x89   :  { %v52_v12 = vpop.permute.xlu0 %51 }
 0x146   :  { %v124_v13 = vpop.f32.mrf.mxu1 }
 0x147   :  { %v125_v14 = vadd.f32 %v124_v13, %v52_v12  ;;  %v1769_v12 = vld [vmem:[%s2962_s5 + $0x78] sm:$0xff] }
 0x148   :  { %v2000_v15 = vpop.f32.mrf.mxu1 }
 0x149   :  { %v128_v16 = vmax.f32 %v125_v14, 0.0  ;;  %v1779_v15 = vld [vmem:[%s2962_s5 + $0xc0] sm:$0xff] }
 0x14b   :  { %139 = vrot.lane.b32.xlu0 %v128_v16, %s2308_s18  ;;  %143 = vrot.lane.b32.xlu1 %v128_v16, %s2309_s19 }
 0x14f   :  { %135 = vrot.lane.b32.xlu0 %v128_v16, %s2302_s11  ;;  %141 = vrot.lane.b32.xlu1 %v128_v16, %s2310_s20 }
 0x153   :  { %131 = vrot.lane.b32.xlu0 %v128_v16, %s2311_s22  ;;  %137 = vrot.lane.b32.xlu1 %v128_v16, %s2312_s23 }
 0x157   :  { %151 = vperm.xlu0 %2278, %v147_v18   ;;  %133 = vrot.lane.b32.xlu1 %v128_v16, %s2303_s12  ;;  %v1785_v18 = vld [vmem:[%s2962_s5 + $0xe8] sm:$0xff] }
 0x15b   :  { %129 = vrot.lane.b32.xlu1 %v128_v16, %s2307_s0 }
 0x15f   :  { %156 = vperm.xlu1 %2279, %v148_v19   ;;  %v1777_v19 = vld [vmem:[%s2962_s5 + $0xb0] sm:$0xff] }
 0x1bd   :  { %v144_v20 = vpop.permute.xlu1 %143  ;;  %v140_v21 = vpop.permute.xlu0 %139 }
 0x1be   :  { %2001 = vmatprep.subr.mxu1 %v144_v20 }
 0x1bf   :  { %2002 = vmatpush3.msra.mxu1 %v144_v20  ;;  %v1784_v20 = vld [vmem:[%s2962_s5 + $0xe0] sm:$0xff] }
 0x1c1   :  { %v142_v22 = vpop.permute.xlu1 %141  ;;  %v136_v23 = vpop.permute.xlu0 %135 }
 0x1c2   :  { %2003 = vmatprep.subr.mxu1 %v142_v22 }
 0x1c3   :  { %2004 = vmatpush3.msra.mxu1 %v142_v22  ;;  %v1783_v22 = vld [vmem:[%s2962_s5 + $0xd8] sm:$0xff] }
 0x1c4   :  { %2005 = vmatprep.subr.mxu1 %v140_v21 }
 0x1c5   :  { %2006 = vmatpush3.msra.mxu1 %v140_v21  ;;  %v138_v24 = vpop.permute.xlu1 %137  ;;  %v132_v26 = vpop.permute.xlu0 %131  ;;  %v1776_v21 = vld [vmem:[%s2962_s5 + $0xa8] sm:$0xff] }
 0x1c6   :  { %2007 = vmatprep.subr.mxu1 %v138_v24 }
 0x1c7   :  { %2008 = vmatpush3.msra.mxu1 %v138_v24 }
 0x1c8   :  { %2009 = vmatprep.subr.mxu1 %v136_v23 }
 0x1c9   :  { %2010 = vmatpush3.msra.mxu1 %v136_v23  ;;  %v134_v25 = vpop.permute.xlu1 %133  ;;  %v1775_v23 = vld [vmem:[%s2962_s5 + $0xa0] sm:$0xff] }
 0x1ca   :  { %2011 = vmatprep.subr.mxu1 %v134_v25 }
 0x1cb   :  { %2012 = vmatpush3.msra.mxu1 %v134_v25  ;;  %v1782_v25 = vld [vmem:[%s2962_s5 + $0xd0] sm:$0xff] }
 0x1cc   :  { %2013 = vmatprep.subr.mxu1 %v132_v26 }
 0x1cd   :  { %2014 = vmatpush3.msra.mxu1 %v132_v26  ;;  %v130_v27 = vpop.permute.xlu1 %129  ;;  %v1781_v26 = vld [vmem:[%s2962_s5 + $0xc8] sm:$0xff] }
 0x1ce   :  { %2015 = vmatprep.subr.mxu1 %v130_v27 }
 0x1cf   :  { %2016 = vmatpush3.msra.mxu1 %v130_v27 }
 0x1d0   :  { %2017 = vmatprep.subr.mxu1 %v128_v16 }
 0x1d1   :  { %2018 = vmatpush3.msra.mxu1 %v128_v16  ;;  %v1778_v16 = vld [vmem:[%s2962_s5 + $0xb8] sm:$0xff] }
 0x1d2   :  { %2020 = vmatmul.mubr.msk.f32.vlgmr.msra.gmra.mxu1 %vm159_vm2, %v146_v28  ;;  %2035 = vmatprep.subr.mxu1 %v2304_v2  ;;  %v152_v40 = vpop.permute.xlu0 %151 }
 0x1d3   :  { %2045 = vmatprep.mubr.msk.f32.mxu1 %vm2305_vm0, %v2304_v2  ;;  %2036 = vmatpush3.msra.mxu1 %v254_v31 }
 0x1d4   :  { %2037 = vmatprep.subr.mxu1 %v2304_v2 }
 0x1d5   :  { %2038 = vmatpush3.msra.mxu1 %v253_v32  ;;  %v1797_v32 = vld [vmem:[%s2962_s5 + $0x138] sm:$0xff] }
 0x1d6   :  { %2039 = vmatprep.subr.mxu1 %v2304_v2 }
 0x1d7   :  { %2040 = vmatpush3.msra.mxu1 %v252_v34  ;;  %v1796_v34 = vld [vmem:[%s2962_s5 + $0x130] sm:$0xff] }
 0x1d8   :  { %2041 = vmatprep.subr.mxu1 %v2304_v2 }
 0x1d9   :  { %2042 = vmatpush3.msra.mxu1 %v251_v36  ;;  %v1795_v36 = vld [vmem:[%s2962_s5 + $0x128] sm:$0xff] }
 0x1da   :  { %2043 = vmatprep.subr.mxu1 %v2304_v2  ;;  %v157_v46 = vpop.permute.xlu1 %156 }
 0x1db   :  { %2044 = vmatpush3.msra.mxu1 %v250_v38 }
 0x1dc   :  { %2061 = vmatprep.subr.mxu1 %v2304_v2 }
 0x292   :  { %v2021_v39 = vpop.f32.mrf.mxu1 }
 0x293   :  { %v238_v48 = vadd.f32 %v2021_v39, %v157_v46  ;;  %v1794_v39 = vld [vmem:[%s2962_s5 + $0x120] sm:$0xff]  ;;  %v1802_v46 = vld [vmem:[%s2962_s5 + $0x158] sm:$0xff] }
 0x294   :  { %v232_v41 = vpop.f32.mrf.mxu1 }
 0x295   :  { %v233_v42 = vadd.f32 %v232_v41, %v152_v40  ;;  %v2473_v51 = vmax.f32 %v238_v48, 0.0  ;;  %v1793_v40 = vld [vmem:[%s2962_s5 + $0x118] sm:$0xff]  ;;  %v1809_v48 = vld [vmem:[%s2962_s5 + $0x188] sm:$0xff] }
 0x297   :  { %v2456_v43 = vmax.f32 %v233_v42, 0.0  ;;  %v930_v54 = vrot.slane %v2473_v51, 7  ;;  %v1015_v55 = vrot.slane %v2473_v51, 1  ;;  %v1101_v56 = vrot.slane %v2473_v51, 2 }
 0x298   :  { %v1187_v57 = vrot.slane %v2473_v51, 3  ;;  %v1273_v58 = vrot.slane %v2473_v51, 4  ;;  %v1359_v59 = vrot.slane %v2473_v51, 5  ;;  %v1445_v60 = vrot.slane %v2473_v51, 6 }
 0x299   :  { %257 = vrot.lane.b32.xlu0 %v2456_v43, %s2313_s25  ;;  %v244_v44 = vrot.slane %v2456_v43, 7  ;;  %v255_v45 = vrot.slane %v2456_v43, 1  ;;  %v414_v47 = vrot.slane %v2456_v43, 2  ;;  %v500_v49 = vrot.slane %v2456_v43, 3 }
 0x29a   :  { %v586_v50 = vrot.slane %v2456_v43, 4  ;;  %v672_v52 = vrot.slane %v2456_v43, 5  ;;  %v758_v53 = vrot.slane %v2456_v43, 6 }
 0x29b   :  { %245 = vrot.lane.b32.xlu1 %v244_v44, %s2313_s25 }
 0x29d   :  { %416 = vrot.lane.b32.xlu0 %v255_v45, %s2313_s25 }
 0x29f   :  { %502 = vrot.lane.b32.xlu1 %v414_v47, %s2313_s25 }
 0x2a1   :  { %588 = vrot.lane.b32.xlu0 %v500_v49, %s2313_s25 }
 0x2a3   :  { %674 = vrot.lane.b32.xlu1 %v586_v50, %s2313_s25 }
 0x2a5   :  { %760 = vrot.lane.b32.xlu0 %v672_v52, %s2313_s25 }
 0x2a7   :  { %845 = vrot.lane.b32.xlu1 %v758_v53, %s2313_s25 }
 0x2a9   :  { %931 = vrot.lane.b32.xlu0 %v930_v54, %s2313_s25 }
 0x2ab   :  { %1017 = vrot.lane.b32.xlu1 %v2473_v51, %s2313_s25 }
 0x2ad   :  { %1103 = vrot.lane.b32.xlu0 %v1015_v55, %s2313_s25 }
 0x2af   :  { %1189 = vrot.lane.b32.xlu1 %v1101_v56, %s2313_s25 }
 0x2b1   :  { %1275 = vrot.lane.b32.xlu0 %v1187_v57, %s2313_s25 }
 0x2b3   :  { %1361 = vrot.lane.b32.xlu1 %v1273_v58, %s2313_s25 }
 0x2b5   :  { %1447 = vrot.lane.b32.xlu0 %v1359_v59, %s2313_s25 }
 0x2b7   :  { %1532 = vrot.lane.b32.xlu1 %v1445_v60, %s2313_s25 }
 0x30b   :  { %v258_v61 = vpop.permute.xlu0 %257 }
 0x30c   :  { %v260_v63 = vsel %vm248_vm3, %v255_v45, %v258_v61  ;;  %v1803_v45 = vld [vmem:[%s2962_s5 + $0x160] sm:$0xff]  ;;  %v1806_v61 = vld [vmem:[%s2962_s5 + $0x170] sm:$0xff] }
 0x30d   :  { %2033 = vmatmul.mubr.msk.f32.vlgmr.msra.gmra.mxu0 %vm267_vm4, %v260_v63  ;;  %v246_v0 = vpop.permute.xlu1 %245 }
 0x30e   :  { %2049 = vmatpush3.msra.mxu0 %v1767_v62  ;;  %v249_v4 = vsel %vm248_vm3, %v2456_v43, %v246_v0  ;;  %2058 = vmatprep.mubr.msk.f32.mxu0 %vm2305_vm0, %v2304_v2  ;;  %v1808_v43 = vld [vmem:[%s2962_s5 + $0x180] sm:$0xff]  ;;  %v1805_v62 = vld [vmem:[%s2962_s5 + $0x168] sm:$0xff] }
 0x30f   :  { %2050 = vmatprep.subr.mxu0 %v2304_v2  ;;  %2046 = vmatmul.mubr.msk.f32.vlgmr.msra.gmra.mxu1 %vm267_vm4, %v249_v4  ;;  %v417_v9 = vpop.permute.xlu0 %416 }
 0x310   :  { %2051 = vmatpush3.msra.mxu0 %v1766_v1  ;;  %2062 = vmatpush3.msra.mxu1 %v1773_v3  ;;  %v419_v13 = vsel %vm248_vm3, %v414_v47, %v417_v9  ;;  %v1815_v1 = vld [vmem:[%s2962_s5 + $0x1b0] sm:$0xff]  ;;  %v1814_v3 = vld [vmem:[%s2962_s5 + $0x1a8] sm:$0xff] }
 0x311   :  { %2052 = vmatprep.subr.mxu0 %v2304_v2  ;;  %2063 = vmatprep.subr.mxu1 %v2304_v2  ;;  %v503_v14 = vpop.permute.xlu1 %502  ;;  %v1811_v9 = vld [vmem:[%s2962_s5 + $0x190] sm:$0xff] }
 0x312   :  { %2053 = vmatpush3.msra.mxu0 %v1765_v5  ;;  %2064 = vmatpush3.msra.mxu1 %v1772_v6  ;;  %v505_v17 = vsel %vm248_vm3, %v500_v49, %v503_v14  ;;  %v1801_v49 = vld [vmem:[%s2962_s5 + $0x150] sm:$0xff]  ;;  %v1821_v5 = vld [vmem:[%s2962_s5 + $0x1d8] sm:$0xff]  ;;  %v1813_v6 = vld [vmem:[%s2962_s5 + $0x1a0] sm:$0xff] }
 0x313   :  { %2054 = vmatprep.subr.mxu0 %v2304_v2  ;;  %2065 = vmatprep.subr.mxu1 %v2304_v2  ;;  %v589_v24 = vpop.permute.xlu0 %588 }
 0x314   :  { %2055 = vmatpush3.msra.mxu0 %v1764_v7  ;;  %2066 = vmatpush3.msra.mxu1 %v1771_v8  ;;  %v591_v27 = vsel %vm248_vm3, %v586_v50, %v589_v24  ;;  %v1807_v50 = vld [vmem:[%s2962_s5 + $0x178] sm:$0xff]  ;;  %v1819_v8 = vld [vmem:[%s2962_s5 + $0x1c8] sm:$0xff] }
 0x315   :  { %2056 = vmatprep.subr.mxu0 %v2304_v2  ;;  %2067 = vmatprep.subr.mxu1 %v2304_v2  ;;  %v675_v28 = vpop.permute.xlu1 %674  ;;  %v1812_v7 = vld [vmem:[%s2962_s5 + $0x198] sm:$0xff]  ;;  %v1829_v24 = vld [vmem:[%s2962_s5 + $0x208] sm:$0xff] }
 0x316   :  { %2057 = vmatpush3.msra.mxu0 %v1763_v10  ;;  %2068 = vmatpush3.msra.mxu1 %v1770_v11  ;;  %v677_v31 = vsel %vm248_vm3, %v672_v52, %v675_v28  ;;  %v1799_v52 = vld [vmem:[%s2962_s5 + $0x140] sm:$0xff] }
 0x317   :  { %2059 = vmatmul.mubr.msk.f32.vlgmr.msra.gmra.mxu0 %vm267_vm4, %v419_v13  ;;  %2069 = vmatprep.subr.mxu1 %v2304_v2  ;;  %v761_v38 = vpop.permute.xlu0 %760  ;;  %v1818_v11 = vld [vmem:[%s2962_s5 + $0x1c0] sm:$0xff] }
 0x318   :  { %2074 = vmatprep.subr.mxu0 %v2304_v2  ;;  %2070 = vmatpush3.msra.mxu1 %v1769_v12  ;;  %v763_v41 = vsel %vm248_vm3, %v758_v53, %v761_v38  ;;  %v1817_v12 = vld [vmem:[%s2962_s5 + $0x1b8] sm:$0xff] }
 0x319   :  { %2071 = vmatprep.mubr.msk.f32.mxu1 %vm2305_vm0, %v2304_v2  ;;  %2075 = vmatpush3.msra.mxu0 %v1779_v15  ;;  %v846_v42 = vpop.permute.xlu1 %845  ;;  %v1827_v15 = vld [vmem:[%s2962_s5 + $0x200] sm:$0xff] }
 0x31a   :  { %2072 = vmatmul.mubr.msk.f32.vlgmr.msra.gmra.mxu1 %vm267_vm4, %v505_v17  ;;  %2076 = vmatprep.subr.mxu0 %v2304_v2  ;;  %v848_v47 = vsel %vm248_vm3, %v244_v44, %v846_v42  ;;  %v1800_v44 = vld [vmem:[%s2962_s5 + $0x148] sm:$0xff]  ;;  %v1635_v42 = vld [vmem:[%s2964_s7 + $0x50] sm:$0xff] }
 0x31b   :  { %2087 = vmatprep.subr.mxu1 %v2304_v2  ;;  %2077 = vmatpush3.msra.mxu0 %v1778_v16  ;;  %v932_v53 = vpop.permute.xlu0 %931  ;;  %v1833_v17 = vld [vmem:[%s2962_s5 + $0x228] sm:$0xff] }
 0x31c   :  { %2088 = vmatpush3.msra.mxu1 %v1785_v18  ;;  %2078 = vmatprep.subr.mxu0 %v2304_v2  ;;  %v934_v63 = vsel %vm248_vm3, %v2473_v51, %v932_v53  ;;  %v1825_v18 = vld [vmem:[%s2962_s5 + $0x1f0] sm:$0xff]  ;;  %v1625_v53 = vld [vmem:[%s2964_s7] sm:$0xff] }
 0x31d   :  { %2089 = vmatprep.subr.mxu1 %v2304_v2  ;;  %2079 = vmatpush3.msra.mxu0 %v1777_v19  ;;  %v1018_v0 = vpop.permute.xlu1 %1017  ;;  %v1824_v19 = vld [vmem:[%s2962_s5 + $0x1e8] sm:$0xff]  ;;  %v1639_v51 = vld [vmem:[%s2964_s7 + $0x70] sm:$0xff] }
 0x31e   :  { %2090 = vmatpush3.msra.mxu1 %v1784_v20  ;;  %2080 = vmatprep.subr.mxu0 %v2304_v2  ;;  %v1020_v4 = vsel %vm248_vm3, %v1015_v55, %v1018_v0  ;;  %v1820_v55 = vld [vmem:[%s2962_s5 + $0x1d0] sm:$0xff]  ;;  %v1831_v20 = vld [vmem:[%s2962_s5 + $0x218] sm:$0xff] }
 0x31f   :  { %2091 = vmatprep.subr.mxu1 %v2304_v2  ;;  %2081 = vmatpush3.msra.mxu0 %v1776_v21  ;;  %v1104_v10 = vpop.permute.xlu0 %1103  ;;  %v1823_v21 = vld [vmem:[%s2962_s5 + $0x1e0] sm:$0xff] }
 0x320   :  { %2092 = vmatpush3.msra.mxu1 %v1783_v22  ;;  %2082 = vmatprep.subr.mxu0 %v2304_v2  ;;  %v1106_v13 = vsel %vm248_vm3, %v1101_v56, %v1104_v10  ;;  %v1826_v56 = vld [vmem:[%s2962_s5 + $0x1f8] sm:$0xff] }
 0x321   :  { %2093 = vmatprep.subr.mxu1 %v2304_v2  ;;  %2083 = vmatpush3.msra.mxu0 %v1775_v23  ;;  %v1190_v14 = vpop.permute.xlu1 %1189  ;;  %v1830_v23 = vld [vmem:[%s2962_s5 + $0x210] sm:$0xff] }
 0x322   :  { %2084 = vmatprep.mubr.msk.f32.mxu0 %vm2305_vm0, %v2304_v2  ;;  %2094 = vmatpush3.msra.mxu1 %v1782_v25  ;;  %v1192_v16 = vsel %vm248_vm3, %v1187_v57, %v1190_v14  ;;  %v1832_v57 = vld [vmem:[%s2962_s5 + $0x220] sm:$0xff] }
 0x323   :  { %2085 = vmatmul.mubr.msk.f32.vlgmr.msra.gmra.mxu0 %vm267_vm4, %v591_v27  ;;  %2095 = vmatprep.subr.mxu1 %v2304_v2  ;;  %v1276_v22 = vpop.permute.xlu0 %1275  ;;  %v1839_v27 = vld [vmem:[%s2962_s5 + $0x250] sm:$0xff] }
 0x324   :  { %2100 = vmatprep.subr.mxu0 %v2304_v2  ;;  %2096 = vmatpush3.msra.mxu1 %v1781_v26  ;;  %v1278_v25 = vsel %vm248_vm3, %v1273_v58, %v1276_v22  ;;  %v1838_v58 = vld [vmem:[%s2962_s5 + $0x248] sm:$0xff] }
 0x325   :  { %2097 = vmatprep.mubr.msk.f32.mxu1 %vm2305_vm0, %v2304_v2  ;;  %2101 = vmatpush3.msra.mxu0 %v1791_v29  ;;  %v1362_v26 = vpop.permute.xlu1 %1361  ;;  %v1845_v29 = vld [vmem:[%s2962_s5 + $0x278] sm:$0xff] }
 0x326   :  { %2098 = vmatmul.mubr.msk.f32.vlgmr.msra.gmra.mxu1 %vm267_vm4, %v677_v31  ;;  %2102 = vmatprep.subr.mxu0 %v2304_v2  ;;  %v1364_v28 = vsel %vm248_vm3, %v1359_v59, %v1362_v26  ;;  %v1844_v59 = vld [vmem:[%s2962_s5 + $0x270] sm:$0xff]  ;;  %v1836_v31 = vld [vmem:[%s2962_s5 + $0x238] sm:$0xff] }
 0x327   :  { %2113 = vmatprep.subr.mxu1 %v2304_v2  ;;  %2103 = vmatpush3.msra.mxu0 %v1790_v30  ;;  %v1837_v30 = vld [vmem:[%s2962_s5 + $0x240] sm:$0xff] }
 0x328   :  { %2114 = vmatpush3.msra.mxu1 %v1797_v32  ;;  %2104 = vmatprep.subr.mxu0 %v2304_v2  ;;  %v1843_v32 = vld [vmem:[%s2962_s5 + $0x268] sm:$0xff] }
 0x329   :  { %2115 = vmatprep.subr.mxu1 %v2304_v2  ;;  %2105 = vmatpush3.msra.mxu0 %v1789_v33  ;;  %v1835_v33 = vld [vmem:[%s2962_s5 + $0x230] sm:$0xff] }
 0x32a   :  { %2116 = vmatpush3.msra.mxu1 %v1796_v34  ;;  %2106 = vmatprep.subr.mxu0 %v2304_v2  ;;  %v1448_v34 = vpop.permute.xlu0 %1447 }
 0x32b   :  { %2117 = vmatprep.subr.mxu1 %v2304_v2  ;;  %2107 = vmatpush3.msra.mxu0 %v1788_v35  ;;  %v1842_v35 = vld [vmem:[%s2962_s5 + $0x260] sm:$0xff]  ;;  %v1450_v38 = vsel %vm248_vm3, %v1445_v60, %v1448_v34  ;;  %v1640_v60 = vld [vmem:[%s2964_s7 + $0x78] sm:$0xff] }
 0x32c   :  { %2118 = vmatpush3.msra.mxu1 %v1795_v36  ;;  %2108 = vmatprep.subr.mxu0 %v2304_v2  ;;  %v1533_v36 = vpop.permute.xlu1 %1532 }
 0x32d   :  { %2119 = vmatprep.subr.mxu1 %v2304_v2  ;;  %2109 = vmatpush3.msra.mxu0 %v1787_v37  ;;  %v1841_v37 = vld [vmem:[%s2962_s5 + $0x258] sm:$0xff] }
 0x32e   :  { %2110 = vmatprep.mubr.msk.f32.mxu0 %vm2305_vm0, %v2304_v2  ;;  %2120 = vmatpush3.msra.mxu1 %v1794_v39  ;;  %v1535_v39 = vsel %vm248_vm3, %v930_v54, %v1533_v36  ;;  %v1638_v54 = vld [vmem:[%s2964_s7 + $0x68] sm:$0xff] }
 0x32f   :  { %2111 = vmatmul.mubr.msk.f32.vlgmr.msra.gmra.mxu0 %vm267_vm4, %v763_v41  ;;  %2121 = vmatprep.subr.mxu1 %v2304_v2  ;;  %v1636_v41 = vld [vmem:[%s2964_s7 + $0x58] sm:$0xff] }
 0x330   :  { %2126 = vmatprep.subr.mxu0 %v2304_v2  ;;  %2122 = vmatpush3.msra.mxu1 %v1793_v40  ;;  %v1637_v40 = vld [vmem:[%s2964_s7 + $0x60] sm:$0xff] }
 0x331   :  { %2123 = vmatprep.mubr.msk.f32.mxu1 %vm2305_vm0, %v2304_v2  ;;  %2127 = vmatpush3.msra.mxu0 %v1803_v45  ;;  %v1634_v45 = vld [vmem:[%s2964_s7 + $0x48] sm:$0xff] }
 0x332   :  { %2124 = vmatmul.mubr.msk.f32.vlgmr.msra.gmra.mxu1 %vm267_vm4, %v848_v47  ;;  %2128 = vmatprep.subr.mxu0 %v2304_v2  ;;  %v1632_v47 = vld [vmem:[%s2964_s7 + $0x38] sm:$0xff] }
 0x333   :  { %2139 = vmatprep.subr.mxu1 %v2304_v2  ;;  %2129 = vmatpush3.msra.mxu0 %v1802_v46  ;;  %v1633_v46 = vld [vmem:[%s2964_s7 + $0x40] sm:$0xff] }
 0x334   :  { %2140 = vmatpush3.msra.mxu1 %v1809_v48  ;;  %2130 = vmatprep.subr.mxu0 %v2304_v2  ;;  %v1631_v48 = vld [vmem:[%s2964_s7 + $0x30] sm:$0xff] }
 0x335   :  { %2141 = vmatprep.subr.mxu1 %v2304_v2  ;;  %2131 = vmatpush3.msra.mxu0 %v1801_v49  ;;  %v1630_v49 = vld [vmem:[%s2964_s7 + $0x28] sm:$0xff] }
 0x336   :  { %2142 = vmatpush3.msra.mxu1 %v1808_v43  ;;  %2132 = vmatprep.subr.mxu0 %v2304_v2  ;;  %v1629_v43 = vld [vmem:[%s2964_s7 + $0x20] sm:$0xff] }
 0x337   :  { %2143 = vmatprep.subr.mxu1 %v2304_v2  ;;  %2133 = vmatpush3.msra.mxu0 %v1800_v44  ;;  %v1628_v44 = vld [vmem:[%s2964_s7 + $0x18] sm:$0xff] }
 0x338   :  { %2144 = vmatpush3.msra.mxu1 %v1807_v50  ;;  %2134 = vmatprep.subr.mxu0 %v2304_v2  ;;  %v1627_v50 = vld [vmem:[%s2964_s7 + $0x10] sm:$0xff] }
 0x339   :  { %2145 = vmatprep.subr.mxu1 %v2304_v2  ;;  %2135 = vmatpush3.msra.mxu0 %v1799_v52  ;;  %v1626_v52 = vld [vmem:[%s2964_s7 + $0x8] sm:$0xff] }
 0x33a   :  { %2136 = vmatprep.mubr.msk.f32.mxu0 %vm2305_vm0, %v2304_v2  ;;  %2146 = vmatpush3.msra.mxu1 %v1806_v61 }
 0x33b   :  { %2137 = vmatmul.mubr.msk.f32.vlgmr.msra.gmra.mxu0 %vm267_vm4, %v934_v63  ;;  %2147 = vmatprep.subr.mxu1 %v2304_v2 }
 0x33c   :  { %2152 = vmatprep.subr.mxu0 %v2304_v2  ;;  %2148 = vmatpush3.msra.mxu1 %v1805_v62 }
 0x33d   :  { %2149 = vmatprep.mubr.msk.f32.mxu1 %vm2305_vm0, %v2304_v2  ;;  %2153 = vmatpush3.msra.mxu0 %v1815_v1 }
 0x33e   :  { %2150 = vmatmul.mubr.msk.f32.vlgmr.msra.gmra.mxu1 %vm267_vm4, %v1020_v4  ;;  %2154 = vmatprep.subr.mxu0 %v2304_v2 }
 0x33f   :  { %2165 = vmatprep.subr.mxu1 %v2304_v2  ;;  %2155 = vmatpush3.msra.mxu0 %v1814_v3 }
 0x340   :  { %2166 = vmatpush3.msra.mxu1 %v1821_v5  ;;  %2156 = vmatprep.subr.mxu0 %v2304_v2 }
 0x341   :  { %2167 = vmatprep.subr.mxu1 %v2304_v2  ;;  %2157 = vmatpush3.msra.mxu0 %v1813_v6 }
 0x342   :  { %2168 = vmatpush3.msra.mxu1 %v1820_v55  ;;  %2158 = vmatprep.subr.mxu0 %v2304_v2 }
 0x343   :  { %2169 = vmatprep.subr.mxu1 %v2304_v2  ;;  %2159 = vmatpush3.msra.mxu0 %v1812_v7 }
 0x344   :  { %2170 = vmatpush3.msra.mxu1 %v1819_v8  ;;  %2160 = vmatprep.subr.mxu0 %v2304_v2 }
 0x345   :  { %2171 = vmatprep.subr.mxu1 %v2304_v2  ;;  %2161 = vmatpush3.msra.mxu0 %v1811_v9 }
 0x346   :  { %2162 = vmatprep.mubr.msk.f32.mxu0 %vm2305_vm0, %v2304_v2  ;;  %2172 = vmatpush3.msra.mxu1 %v1818_v11 }
 0x347   :  { %2163 = vmatmul.mubr.msk.f32.vlgmr.msra.gmra.mxu0 %vm267_vm4, %v1106_v13  ;;  %2173 = vmatprep.subr.mxu1 %v2304_v2 }
 0x348   :  { %2178 = vmatprep.subr.mxu0 %v2304_v2  ;;  %2174 = vmatpush3.msra.mxu1 %v1817_v12 }
 0x349   :  { %2175 = vmatprep.mubr.msk.f32.mxu1 %vm2305_vm0, %v2304_v2  ;;  %2179 = vmatpush3.msra.mxu0 %v1827_v15 }
 0x34a   :  { %2176 = vmatmul.mubr.msk.f32.vlgmr.msra.gmra.mxu1 %vm267_vm4, %v1192_v16  ;;  %2180 = vmatprep.subr.mxu0 %v2304_v2 }
 0x34b   :  { %2191 = vmatprep.subr.mxu1 %v2304_v2  ;;  %2181 = vmatpush3.msra.mxu0 %v1826_v56 }
 0x34c   :  { %2192 = vmatpush3.msra.mxu1 %v1833_v17  ;;  %2182 = vmatprep.subr.mxu0 %v2304_v2 }
 0x34d   :  { %2193 = vmatprep.subr.mxu1 %v2304_v2  ;;  %2183 = vmatpush3.msra.mxu0 %v1825_v18 }
 0x34e   :  { %2194 = vmatpush3.msra.mxu1 %v1832_v57  ;;  %2184 = vmatprep.subr.mxu0 %v2304_v2 }
 0x34f   :  { %2195 = vmatprep.subr.mxu1 %v2304_v2  ;;  %2185 = vmatpush3.msra.mxu0 %v1824_v19 }
 0x350   :  { %2196 = vmatpush3.msra.mxu1 %v1831_v20  ;;  %2186 = vmatprep.subr.mxu0 %v2304_v2 }
 0x351   :  { %2197 = vmatprep.subr.mxu1 %v2304_v2  ;;  %2187 = vmatpush3.msra.mxu0 %v1823_v21 }
 0x352   :  { %2188 = vmatprep.mubr.msk.f32.mxu0 %vm2305_vm0, %v2304_v2  ;;  %2198 = vmatpush3.msra.mxu1 %v1830_v23 }
 0x353   :  { %2189 = vmatmul.mubr.msk.f32.vlgmr.msra.gmra.mxu0 %vm267_vm4, %v1278_v25  ;;  %2199 = vmatprep.subr.mxu1 %v2304_v2 }
 0x354   :  { %2204 = vmatprep.subr.mxu0 %v2304_v2  ;;  %2200 = vmatpush3.msra.mxu1 %v1829_v24 }
 0x355   :  { %2201 = vmatprep.mubr.msk.f32.mxu1 %vm2305_vm0, %v2304_v2  ;;  %2205 = vmatpush3.msra.mxu0 %v1839_v27 }
 0x356   :  { %2202 = vmatmul.mubr.msk.f32.vlgmr.msra.gmra.mxu1 %vm267_vm4, %v1364_v28  ;;  %2206 = vmatprep.subr.mxu0 %v2304_v2 }
 0x357   :  { %2217 = vmatprep.subr.mxu1 %v2304_v2  ;;  %2207 = vmatpush3.msra.mxu0 %v1838_v58 }
 0x358   :  { %2218 = vmatpush3.msra.mxu1 %v1845_v29  ;;  %2208 = vmatprep.subr.mxu0 %v2304_v2 }
 0x359   :  { %2219 = vmatprep.subr.mxu1 %v2304_v2  ;;  %2209 = vmatpush3.msra.mxu0 %v1837_v30 }
 0x35a   :  { %2220 = vmatpush3.msra.mxu1 %v1844_v59  ;;  %2210 = vmatprep.subr.mxu0 %v2304_v2 }
 0x35b   :  { %2221 = vmatprep.subr.mxu1 %v2304_v2  ;;  %2211 = vmatpush3.msra.mxu0 %v1836_v31 }
 0x35c   :  { %2222 = vmatpush3.msra.mxu1 %v1843_v32  ;;  %2212 = vmatprep.subr.mxu0 %v2304_v2 }
 0x35d   :  { %2223 = vmatprep.subr.mxu1 %v2304_v2  ;;  %2213 = vmatpush3.msra.mxu0 %v1835_v33 }
 0x35e   :  { %2214 = vmatprep.mubr.msk.f32.mxu0 %vm2305_vm0, %v2304_v2  ;;  %2224 = vmatpush3.msra.mxu1 %v1842_v35 }
 0x35f   :  { %2215 = vmatmul.mubr.msk.f32.vlgmr.msra.gmra.mxu0 %vm267_vm4, %v1450_v38  ;;  %2225 = vmatprep.subr.mxu1 %v2304_v2 }
 0x360   :  { %2226 = vmatpush3.msra.mxu1 %v1841_v37  ;;  %2227 = vmatprep.mubr.msk.f32.mxu1 %vm2305_vm0, %v2304_v2  ;;  %v1847_v37 = vld [vmem:[%s2963_s6] ss:$0 sm:$0xff]  ;;  %s2314_s6 = smov [#allocation2]  }
 0x361   :  { %2228 = vmatmul.mubr.msk.f32.vlgmr.msra.gmra.mxu1 %vm267_vm4, %v1535_v39  ;;  %2230 = vmatprep.subr.mxu0 %v2304_v2  ;;  %s1745_s24 = sshll.u32 %s2314_s6, 4  ;;  %s1746_s24 = int_to_ptr.vmem [resolvable:$true] %s1745_s24 }
 0x362   :  { %2262 = vmatprep.mubr.msk.f32.mxu0 %vm2305_vm0, %v2304_v2  ;;  %2231 = vmatpush3.msra.mxu0 %v1640_v60  ;;  %p2285_p1 = scmp.lt.s32.totalorder %s1746_s24, %s1746_s24 }
 0x363   :  { %2232 = vmatprep.subr.mxu0 %v2304_v2 }
 0x364   :  { %2233 = vmatpush3.msra.mxu0 %v1639_v51 }
 0x365   :  { %2234 = vmatprep.subr.mxu0 %v2304_v2 }
 0x366   :  { %2235 = vmatpush3.msra.mxu0 %v1638_v54  ;;  %v1848_v54 = vld [vmem:[%s2965_s8] ss:$0 sm:$0xff]  ;;  %s2280_s8 = scalar_lea.vmem %s1746_s24, 32 }
 0x367   :  { %2236 = vmatprep.subr.mxu0 %v2304_v2  ;;  %p2281_p0 = scmp.ne.s32.totalorder %s1746_s24, %s2280_s8  ;;  %p2286_p2 = scmp.lt.s32.totalorder %s2280_s8, %s2280_s8 }
 0x368   :  { %2237 = vmatpush3.msra.mxu0 %v1637_v40 }
 0x369   :  { %2238 = vmatprep.subr.mxu0 %v2304_v2  ;;  %p2287_p3 = por %p2286_p2, %p2285_p1 }
 0x36a   :  { %2239 = vmatpush3.msra.mxu0 %v1636_v41 }
 0x36b   :  { %2240 = vmatprep.subr.mxu0 %v2304_v2  ;;  %p2288_p4 = pnand %p2287_p3, %p2281_p0 }
 0x36c   :  { %2241 = vmatpush3.msra.mxu0 %v1635_v42 }
 0x36d   :  { %2242 = vmatprep.subr.mxu0 %v2304_v2 }
 0x36e   :  { %2243 = vmatpush3.msra.mxu0 %v1634_v45 }
 0x36f   :  { %2244 = vmatprep.subr.mxu0 %v2304_v2 }
 0x370   :  { %2245 = vmatpush3.msra.mxu0 %v1633_v46 }
 0x371   :  { %2246 = vmatprep.subr.mxu0 %v2304_v2 }
 0x372   :  { %2247 = vmatpush3.msra.mxu0 %v1632_v47 }
 0x373   :  { %2248 = vmatprep.subr.mxu0 %v2304_v2 }
 0x374   :  { %2249 = vmatpush3.msra.mxu0 %v1631_v48 }
 0x375   :  { %2250 = vmatprep.subr.mxu0 %v2304_v2 }
 0x376   :  { %2251 = vmatpush3.msra.mxu0 %v1630_v49 }
 0x377   :  { %2252 = vmatprep.subr.mxu0 %v2304_v2 }
 0x378   :  { %2253 = vmatpush3.msra.mxu0 %v1629_v43 }
 0x379   :  { %2254 = vmatprep.subr.mxu0 %v2304_v2 }
 0x37a   :  { %2255 = vmatpush3.msra.mxu0 %v1628_v44 }
 0x37b   :  { %2256 = vmatprep.subr.mxu0 %v2304_v2 }
 0x37c   :  { %2257 = vmatpush3.msra.mxu0 %v1627_v50 }
 0x37d   :  { %2258 = vmatprep.subr.mxu0 %v2304_v2 }
 0x37e   :  { %2259 = vmatpush3.msra.mxu0 %v1626_v52 }
 0x37f   :  { %2260 = vmatprep.subr.mxu0 %v2304_v2 }
 0x380   :  { %2261 = vmatpush3.msra.mxu0 %v1625_v53 }
 0x3cd   :  { %v337_v61 = vpop.f32.mrf.mxu0 }
 0x3cf   :  { %v2034_v62 = vpop.f32.mrf.mxu0  ;;  %v410_v63 = vpop.f32.mrf.mxu1 }
 0x3d0   :  { %v411_v12 = vadd.f32 %v410_v63, %v337_v61 }
 0x3d1   :  { %v2047_v0 = vpop.f32.mrf.mxu1 }
 0x3d7   :  { %v495_v1 = vpop.f32.mrf.mxu0 }
 0x3d8   :  { %v499_v14 = vadd.f32 %v495_v1, %v411_v12 }
 0x3d9   :  { %v2060_v3 = vpop.f32.mrf.mxu0 }
 0x3da   :  { %v581_v4 = vpop.f32.mrf.mxu1 }
 0x3db   :  { %v585_v16 = vadd.f32 %v581_v4, %v499_v14 }
 0x3dc   :  { %v2073_v5 = vpop.f32.mrf.mxu1 }
 0x3e3   :  { %v667_v6 = vpop.f32.mrf.mxu0 }
 0x3e4   :  { %v671_v18 = vadd.f32 %v667_v6, %v585_v16 }
 0x3e5   :  { %v2086_v55 = vpop.f32.mrf.mxu0 }
 0x3e6   :  { %v753_v7 = vpop.f32.mrf.mxu1 }
 0x3e7   :  { %v757_v57 = vadd.f32 %v753_v7, %v671_v18 }
 0x3e8   :  { %v2099_v8 = vpop.f32.mrf.mxu1 }
 0x3ef   :  { %v839_v9 = vpop.f32.mrf.mxu0 }
 0x3f0   :  { %v843_v20 = vadd.f32 %v839_v9, %v757_v57 }
 0x3f1   :  { %v2112_v10 = vpop.f32.mrf.mxu0 }
 0x3f2   :  { %v924_v2 = vpop.f32.mrf.mxu1 }
 0x3f3   :  { %v928_v23 = vadd.f32 %v924_v2, %v843_v20 }
 0x3f4   :  { %v2125_v11 = vpop.f32.mrf.mxu1 }
 0x3fb   :  { %v1010_v13 = vpop.f32.mrf.mxu0 }
 0x3fc   :  { %v1014_v25 = vadd.f32 %v1010_v13, %v928_v23 }
 0x3fd   :  { %v2138_v15 = vpop.f32.mrf.mxu0 }
 0x3fe   :  { %v1096_v56 = vpop.f32.mrf.mxu1 }
 0x3ff   :  { %v1100_v26 = vadd.f32 %v1096_v56, %v1014_v25 }
 0x400   :  { %v2151_v17 = vpop.f32.mrf.mxu1 }
 0x407   :  { %v1182_v19 = vpop.f32.mrf.mxu0 }
 0x408   :  { %v1186_v58 = vadd.f32 %v1182_v19, %v1100_v26 }
 0x409   :  { %v2164_v21 = vpop.f32.mrf.mxu0 }
 0x40a   :  { %v1268_v22 = vpop.f32.mrf.mxu1 }
 0x40b   :  { %v1272_v30 = vadd.f32 %v1268_v22, %v1186_v58 }
 0x40c   :  { %v2177_v24 = vpop.f32.mrf.mxu1 }
 0x413   :  { %v1354_v27 = vpop.f32.mrf.mxu0 }
 0x414   :  { %v1358_v31 = vadd.f32 %v1354_v27, %v1272_v30 }
 0x415   :  { %v2190_v28 = vpop.f32.mrf.mxu0 }
 0x416   :  { %v1440_v29 = vpop.f32.mrf.mxu1 }
 0x417   :  { %v1444_v32 = vadd.f32 %v1440_v29, %v1358_v31 }
 0x418   :  { %v2203_v59 = vpop.f32.mrf.mxu1 }
 0x41f   :  { %v1526_v33 = vpop.f32.mrf.mxu0 }
 0x420   :  { %v1530_v34 = vadd.f32 %v1526_v33, %v1444_v32 }
 0x421   :  { %v2216_v35 = vpop.f32.mrf.mxu0  ;;  %v1611_v36 = vpop.f32.mrf.mxu1 }
 0x422   :  { %v1615_v38 = vadd.f32 %v1611_v36, %v1530_v34 }
 0x423   :  { %v2229_v39 = vpop.f32.mrf.mxu1 }
 0x424   :  { %v1623_v60 = vadd.f32 %v1847_v37, %v1615_v38 }
 0x426   :  { %v1624_v51 = vmax.f32 %v1623_v60, 0.0 }
 0x428   :  { %2263 = vmatmul.mubr.f32.vlgmr.msra.gmra.mxu0 %v1624_v51 }
 0x4e8   :  { %v1714_v40 = vpop.f32.mrf.mxu0 }
 0x4e9   :  { %v1715_v41 = vadd.f32 %v1848_v54, %v1714_v40 }
 0x4ea   :  { %v2264_v42 = vpop.f32.mrf.mxu0 }
 0x4eb   :  { %1719 = vrot.lane.b32.xlu0 %v1715_v41, %s2307_s0 }
 0x4ef   :  { %1730 = vperm.xlu0 %2278, %v1715_v41  }
 0x55d   :  { %v1720_v45 = vpop.permute.xlu0 %1719 }
 0x55e   :  { %v1723_v46 = vsel %vm1722_vm5, %v1720_v45, 0.0 }
 0x55f   :  { %1724 = vadd.xlane.f32.xlu1 %v1723_v46 }
 0x56a   :  { %v1731_v43 = vpop.permute.xlu0 %1730 }
 0x5e8   :  { %v1725_v47 = vpop.xlane.xlu1 %1724 }
 0x5e9   :  { %v1727_v48 = vmul.f32 0.16666667, %v1725_v47 }
 0x5eb   :  { %v1728_v49 = vsub.f32 %v1715_v41, %v1727_v48 }
 0x5ed   :  { %v1733_v44 = vadd.f32 %v1731_v43, %v1728_v49 }
 0x5ef   :  { %1735 = vrot.lane.b32.xlu0 %v1733_v44, %s2307_s0 }
 0x661   :  { %v1736_v50 = vpop.permute.xlu0 %1735 }
 0x662   :  { %1738 = vst.msk [vmem:[#allocation2] sm:$0x3] %vm1722_vm5, %v1736_v50 }
 0x663   :  { %2291 = shalt.err (!%p2288_p4)
}
 0x664   :  { %1748 = dma.vmem_to_hbm [thread:$0]  %s1746_s24, 32, %s2966_s9, [#allocation3]  }
 0x665   :  { %2300 = dma.done.wait [#allocation3], 32  }
 0x666   :  { %2301 = vsyncadd [#allocation3], 4294967264 }
 0x667   :  { %1752 = vsyncpa [#allocation3], 1 }

</bundles_post_ra>
